<compile_context>
chip_gen: v7x
topology: tpu7x:2x2x1
jax: 0.10.0
libtpu: 0.0.40
codegen_flags: <defaults>
</compile_context>

<pallas_src>
import functools
import math

import jax
import jax.numpy as jnp
import numpy as np
from jax.experimental import pallas as pl
from jax.experimental.pallas import tpu as pltpu

_EPS = 1e-24  # guards sqrt/1-over-norm when a row coincides with its reference point


# ----------------------------- math helpers -----------------------------------

def _mobius_add(a, b, c):
    """Mobius addition in the Poincare ball (last-dim reductions, recip-multiply)."""
    a2 = jnp.sum(a * a, axis=-1, keepdims=True)
    b2 = jnp.sum(b * b, axis=-1, keepdims=True)
    ab = jnp.sum(a * b, axis=-1, keepdims=True)
    num = (1.0 + 2.0 * c * ab + c * b2) * a + (1.0 - c * a2) * b
    den = 1.0 + 2.0 * c * ab + (c * c) * a2 * b2
    return num * (1.0 / den)          # (rows,1) reciprocal + (rows,C) multiply


def _pick_tile(n, candidates=(256, 128, 64, 32, 16, 8)):
    """Largest candidate tile that divides n (falls back to n itself)."""
    for t in candidates:
        if t <= n and n % t == 0:
            return t
    return n


# ----------------------------- kernel 1: logmap + QKV ---------------------------

def _logmap_qkv_kernel(x_ref, ref_ref, w_ref, b_ref, qkv_ref, *, c):
    x = x_ref[0].astype(jnp.float32)          # (tt, C)
    r = ref_ref[0].astype(jnp.float32)        # (tt, C)
    sqrt_c = c ** 0.5

    # logmap(ref, x, c)
    r2 = jnp.sum(r * r, axis=-1, keepdims=True)
    mob = _mobius_add(-r, x, c)                                       # (tt, C)
    mob_norm = jnp.sqrt(jnp.sum(mob * mob, axis=-1, keepdims=True) + _EPS)
    inv_norm = pl.reciprocal(mob_norm, approx=True)
    # 2 / (scaling_factor(ref) * sqrt(c)) == (1 + c*||ref||^2) / sqrt(c)
    const = (1.0 + c * r2) * (1.0 / sqrt_c)
    arg = jnp.clip(jnp.sqrt(c * mob_norm), -0.999, 0.999)
    atanh = 0.5 * jnp.log((1.0 + arg) / (1.0 - arg))                  # one log, not two
    x_tan = (const * atanh * inv_norm) * mob                          # (tt, C)

    # fused QKV projection on the MXU (bf16 inputs, f32 accumulation)
    qkv = jnp.dot(x_tan.astype(w_ref.dtype), w_ref[...],
                  preferred_element_type=jnp.float32) + b_ref[...]    # (tt, 3C)
    qkv_ref[0] = qkv.astype(qkv_ref.dtype)


# ----------------------- kernel 2: causal flash attention -----------------------

def _flash_attn_kernel(q_ref, k_ref, v_ref, o_ref, m_sc, l_sc, acc_sc,
                       *, tq, tk, scale):
    qi = pl.program_id(2)
    ki = pl.program_id(3)

    @pl.when(ki == 0)
    def _init():
        m_sc[...] = jnp.full_like(m_sc, -jnp.inf)
        l_sc[...] = jnp.zeros_like(l_sc)
        acc_sc[...] = jnp.zeros_like(acc_sc)

    # skip KV blocks lying entirely above the causal diagonal for this query tile
    @pl.when(ki * tk <= qi * tq + (tq - 1))
    def _compute():
        q = q_ref[0, 0]                        # (tq, hd)
        k = k_ref[0, 0]                        # (tk, hd)
        v = v_ref[0, 0]                        # (tk, hd)

        # q @ k^T without an explicit transpose: contract the last dims on the MXU
        s = jax.lax.dot_general(q, k, (((1,), (1,)), ((), ())),
                                preferred_element_type=jnp.float32) * scale
        row = qi * tq + jax.lax.broadcasted_iota(jnp.int32, (tq, tk), 0)
        col = ki * tk + jax.lax.broadcasted_iota(jnp.int32, (tq, tk), 1)
        s = jnp.where(row >= col, s, -jnp.inf)

        m_prev = m_sc[...]
        m_new = jnp.maximum(m_prev, jnp.max(s, axis=-1, keepdims=True))
        alpha = jnp.exp(m_prev - m_new)
        p = jnp.exp(s - m_new)                                    # unnormalized probs
        l_sc[...] = alpha * l_sc[...] + jnp.sum(p, axis=-1, keepdims=True)
        acc_sc[...] = alpha * acc_sc[...] + jnp.dot(
            p.astype(v.dtype), v, preferred_element_type=jnp.float32)
        m_sc[...] = m_new

    @pl.when(ki == pl.num_programs(3) - 1)
    def _finalize():
        # deferred softmax normalization: one approx reciprocal per row on the EUP
        o_ref[0, 0] = (acc_sc[...] *
                       pl.reciprocal(l_sc[...], approx=True)).astype(o_ref.dtype)


# --------------------- kernel 3: expmap + output projection ---------------------

def _expmap_proj_kernel(y_ref, ref_ref, w_ref, b_ref, o_ref, *, c, map_back):
    y = y_ref[0].astype(jnp.float32)          # (tt, C)
    if map_back:
        r = ref_ref[0].astype(jnp.float32)
        sqrt_c = c ** 0.5
        r2 = jnp.sum(r * r, axis=-1, keepdims=True)
        lam = 2.0 / (1.0 + c * r2)                                   # scaling_factor(ref)
        v2 = jnp.sum(y * y, axis=-1, keepdims=True) + _EPS
        inv_vnorm = pl.reciprocal(jnp.sqrt(v2), approx=True)
        second = ((1.0 / sqrt_c) * jnp.tanh(jnp.sqrt(c * lam * v2 * 0.5)) * inv_vnorm) * y
        y = _mobius_add(r, second, c)

    out = jnp.dot(y.astype(w_ref.dtype), w_ref[...],
                  preferred_element_type=jnp.float32) + b_ref[...]    # (tt, C)
    o_ref[0] = out.astype(o_ref.dtype)


# ----------------------------------- wrapper -------------------------------------

def hyperbolic_causal_self_attention(x, wqkv, bqkv, wproj, bproj, *,
                                     n_head, curvature, map_back=True,
                                     compute_dtype=jnp.bfloat16):
    """x: (B, T, C) float32. Returns (y, reference_point), both (B, T, C)."""
    B, T, C = x.shape
    assert C % n_head == 0
    hd = C // n_head
    c = max(0.0001, min(float(curvature), 1.0))     # clamp_curvature (scalar path)

    # reference point = x shifted down one row, zero first row.  Pure layout op ->
    # produced by XLA in the wrapper, never written back by a kernel.
    ref = jnp.pad(x[:, :T - 1, :], ((0, 0), (1, 0), (0, 0)))

    tt = _pick_tile(T)      # row tile for the pointwise + projection kernels
    tq = _pick_tile(T)      # query tile
    tk = _pick_tile(T)      # key/value tile

    # ship weights in bf16 (halves weight DMA / resident VMEM); biases stay f32
    w_qkv = wqkv.astype(compute_dtype)
    w_proj = wproj.astype(compute_dtype)
    b_qkv = bqkv.astype(jnp.float32)
    b_proj = bproj.astype(jnp.float32)

    vmem_cap = 32 * 1024 * 1024
    cparams_2d = pltpu.CompilerParams(
        dimension_semantics=("parallel", "parallel"),
        vmem_limit_bytes=vmem_cap)

    # ---- kernel 1: logmap + QKV projection -> qkv (B, T, 3C) ---------------------
    qkv = pl.pallas_call(
        functools.partial(_logmap_qkv_kernel, c=c),
        out_shape=jax.ShapeDtypeStruct((B, T, 3 * C), compute_dtype),
        grid_spec=pltpu.PrefetchScalarGridSpec(
            num_scalar_prefetch=0,
            grid=(B, T // tt),
            in_specs=[
                pl.BlockSpec((1, tt, C), lambda b, t: (b, t, 0)),     # x tile
                pl.BlockSpec((1, tt, C), lambda b, t: (b, t, 0)),     # ref tile
                pl.BlockSpec((C, 3 * C), lambda b, t: (0, 0)),        # W_qkv (resident)
                pl.BlockSpec((1, 3 * C), lambda b, t: (0, 0)),        # b_qkv
            ],
            out_specs=pl.BlockSpec((1, tt, 3 * C), lambda b, t: (b, t, 0)),
        ),
        compiler_params=cparams_2d,
    )(x, ref, w_qkv, b_qkv)

    # split heads (same view/transpose the PyTorch module does; handled by XLA so the
    # attention kernel sees head-major (B, H, T, hd) arrays with a lane-dense last dim)
    q, k, v = jnp.split(qkv, 3, axis=-1)
    q = q.reshape(B, T, n_head, hd).transpose(0, 2, 1, 3)
    k = k.reshape(B, T, n_head, hd).transpose(0, 2, 1, 3)
    v = v.reshape(B, T, n_head, hd).transpose(0, 2, 1, 3)

    # ---- kernel 2: causal flash attention -> o (B, H, T, hd) ---------------------
    o = pl.pallas_call(
        functools.partial(_flash_attn_kernel, tq=tq, tk=tk,
                          scale=1.0 / math.sqrt(hd)),
        out_shape=jax.ShapeDtypeStruct((B, n_head, T, hd), compute_dtype),
        grid_spec=pltpu.PrefetchScalarGridSpec(
            num_scalar_prefetch=0,
            grid=(B, n_head, T // tq, T // tk),
            in_specs=[
                pl.BlockSpec((1, 1, tq, hd), lambda b, h, qi, ki: (b, h, qi, 0)),
                pl.BlockSpec((1, 1, tk, hd), lambda b, h, qi, ki: (b, h, ki, 0)),
                pl.BlockSpec((1, 1, tk, hd), lambda b, h, qi, ki: (b, h, ki, 0)),
            ],
            out_specs=pl.BlockSpec((1, 1, tq, hd),
                                   lambda b, h, qi, ki: (b, h, qi, 0)),
            scratch_shapes=[
                pltpu.VMEM((tq, 1), jnp.float32),     # running max
                pltpu.VMEM((tq, 1), jnp.float32),     # running sum
                pltpu.VMEM((tq, hd), jnp.float32),    # running output accumulator
            ],
        ),
        compiler_params=pltpu.CompilerParams(
            dimension_semantics=("parallel", "parallel", "parallel", "arbitrary"),
            vmem_limit_bytes=vmem_cap),
    )(q, k, v)

    y = o.transpose(0, 2, 1, 3).reshape(B, T, C)

    # ---- kernel 3: expmap + output projection -> (B, T, C) -----------------------
    out = pl.pallas_call(
        functools.partial(_expmap_proj_kernel, c=c, map_back=map_back),
        out_shape=jax.ShapeDtypeStruct((B, T, C), x.dtype),
        grid_spec=pltpu.PrefetchScalarGridSpec(
            num_scalar_prefetch=0,
            grid=(B, T // tt),
            in_specs=[
                pl.BlockSpec((1, tt, C), lambda b, t: (b, t, 0)),     # attention out tile
                pl.BlockSpec((1, tt, C), lambda b, t: (b, t, 0)),     # ref tile
                pl.BlockSpec((C, C), lambda b, t: (0, 0)),            # W_proj (resident)
                pl.BlockSpec((1, C), lambda b, t: (0, 0)),            # b_proj
            ],
            out_specs=pl.BlockSpec((1, tt, C), lambda b, t: (b, t, 0)),
        ),
        compiler_params=cparams_2d,
    )(y, ref, w_proj, b_proj)

    return out, ref


# ----------------------------- pure-JAX reference --------------------------------

def _reference_forward(x, wqkv, bqkv, wproj, bproj, n_head, curvature, map_back):
    B, T, C = x.shape
    c = max(0.0001, min(float(curvature), 1.0))
    sqrt_c = c ** 0.5
    hd = C // n_head

    ref = jnp.pad(x[:, :T - 1, :], ((0, 0), (1, 0), (0, 0)))

    # logmap
    lam = 2.0 / (1.0 + c * jnp.sum(ref * ref, axis=-1, keepdims=True))
    mob = _mobius_add(-ref, x, c)
    mob_norm = jnp.sqrt(jnp.sum(mob * mob, axis=-1, keepdims=True))
    arg = jnp.clip(jnp.sqrt(c * mob_norm), -0.999, 0.999)
    xt = (2.0 / (lam * sqrt_c)) * jnp.arctanh(arg) * (mob / mob_norm)

    qkv = xt @ wqkv + bqkv
    q, k, v = jnp.split(qkv, 3, axis=-1)
    q = q.reshape(B, T, n_head, hd).transpose(0, 2, 1, 3)
    k = k.reshape(B, T, n_head, hd).transpose(0, 2, 1, 3)
    v = v.reshape(B, T, n_head, hd).transpose(0, 2, 1, 3)

    s = jnp.einsum("bhqd,bhkd->bhqk", q, k) / math.sqrt(hd)
    mask = jnp.tril(jnp.ones((T, T), bool))
    s = jnp.where(mask[None, None], s, -jnp.inf)
    p = jax.nn.softmax(s, axis=-1)
    y = jnp.einsum("bhqk,bhkd->bhqd", p, v)
    y = y.transpose(0, 2, 1, 3).reshape(B, T, C)

    if map_back:
        v_norm = jnp.sqrt(jnp.sum(y * y, axis=-1, keepdims=True))
        second = (1.0 / sqrt_c) * jnp.tanh(
            jnp.sqrt(c * lam * v_norm * v_norm / 2.0)) * y / v_norm
        y = _mobius_add(ref, second, c)

    y = y @ wproj + bproj
    return y, ref


# ----------------------------------- main -----------------------------------------

if __name__ == "__main__":
    B, T, C, n_head = 2, 8, 32, 4
    curvature = 0.5

    key = jax.random.PRNGKey(0)
    kx, k1, k2, k3, k4 = jax.random.split(key, 5)

    # keep inputs small so they lie safely inside the Poincare ball neighborhood
    x = 0.1 * jax.random.normal(kx, (B, T, C), jnp.float32)
    wqkv = 0.02 * jax.random.normal(k1, (C, 3 * C), jnp.float32)
    bqkv = 0.01 * jax.random.normal(k2, (1, 3 * C), jnp.float32)
    wproj = 0.02 * jax.random.normal(k3, (C, C), jnp.float32)
    bproj = 0.01 * jax.random.normal(k4, (1, C), jnp.float32)

    y, ref_pt = hyperbolic_causal_self_attention(
        x, wqkv, bqkv, wproj, bproj,
        n_head=n_head, curvature=curvature, map_back=True)
    jax.block_until_ready((y, ref_pt))

    y_ref, ref_ref = _reference_forward(
        x, wqkv, bqkv, wproj, bproj, n_head, curvature, True)

    np.testing.assert_allclose(np.asarray(ref_pt), np.asarray(ref_ref),
                               rtol=2e-3, atol=2e-3)
    np.testing.assert_allclose(np.asarray(y), np.asarray(y_ref),
                               rtol=2e-3, atol=2e-3)

    print("KERNEL_OK")
</pallas_src>

<mosaic_0001>
module attributes {stable_mosaic.version = 11 : i64} {
  func.func @_logmap_qkv_kernel(%arg0: i32, %arg1: i32, %arg2: memref<1x8x32xf32, #tpu.memory_space<vmem>>, %arg3: memref<1x8x32xf32, #tpu.memory_space<vmem>>, %arg4: memref<32x96xbf16, #tpu.memory_space<vmem>>, %arg5: memref<1x96xf32, #tpu.memory_space<vmem>>, %arg6: memref<1x8x96xbf16, #tpu.memory_space<vmem>>) attributes {dimension_semantics = [#tpu.dimension_semantics<parallel>, #tpu.dimension_semantics<parallel>], iteration_bounds = array<i64: 2, 1>, scalar_prefetch = 0 : i64, scratch_operands = 0 : i64, tpu.core_type = #tpu.core_type<tc>, window_params = [{transform_indices = @transform_0, window_bounds = array<i64: 1, 8, 32>}, {transform_indices = @transform_1, window_bounds = array<i64: 1, 8, 32>}, {pipeline_mode = #tpu.pipeline_mode<synchronous>, transform_indices = @transform_2, window_bounds = array<i64: 32, 96>}, {pipeline_mode = #tpu.pipeline_mode<synchronous>, transform_indices = @transform_3, window_bounds = array<i64: 1, 96>}, {transform_indices = @transform_4, window_bounds = array<i64: 1, 8, 96>}]} {
    %c0 = arith.constant 0 : index
    %c0_0 = arith.constant 0 : index
    %c0_1 = arith.constant 0 : index
    %0 = vector.load %arg2[%c0, %c0_0, %c0_1] : memref<1x8x32xf32, #tpu.memory_space<vmem>>, vector<1x8x32xf32>
    %1 = vector.shape_cast %0 : vector<1x8x32xf32> to vector<8x32xf32>
    %c0_2 = arith.constant 0 : index
    %c0_3 = arith.constant 0 : index
    %c0_4 = arith.constant 0 : index
    %2 = vector.load %arg3[%c0_2, %c0_3, %c0_4] : memref<1x8x32xf32, #tpu.memory_space<vmem>>, vector<1x8x32xf32>
    %3 = vector.shape_cast %2 : vector<1x8x32xf32> to vector<8x32xf32>
    %4 = arith.mulf %3, %3 : vector<8x32xf32>
    %cst = arith.constant dense<0.000000e+00> : vector<8xf32>
    %5 = vector.multi_reduction <add>, %4, %cst [1] : vector<8x32xf32> to vector<8xf32>
    %6 = vector.shape_cast %5 : vector<8xf32> to vector<8x1xf32>
    %cst_5 = arith.constant 0.000000e+00 : f32
    %7 = vector.broadcast %cst_5 : f32 to vector<8x32xf32>
    %8 = arith.subf %7, %3 : vector<8x32xf32>
    %9 = arith.mulf %8, %8 : vector<8x32xf32>
    %cst_6 = arith.constant dense<0.000000e+00> : vector<8xf32>
    %10 = vector.multi_reduction <add>, %9, %cst_6 [1] : vector<8x32xf32> to vector<8xf32>
    %11 = vector.shape_cast %10 : vector<8xf32> to vector<8x1xf32>
    %12 = arith.mulf %1, %1 : vector<8x32xf32>
    %cst_7 = arith.constant dense<0.000000e+00> : vector<8xf32>
    %13 = vector.multi_reduction <add>, %12, %cst_7 [1] : vector<8x32xf32> to vector<8xf32>
    %14 = vector.shape_cast %13 : vector<8xf32> to vector<8x1xf32>
    %15 = arith.mulf %8, %1 : vector<8x32xf32>
    %cst_8 = arith.constant dense<0.000000e+00> : vector<8xf32>
    %16 = vector.multi_reduction <add>, %15, %cst_8 [1] : vector<8x32xf32> to vector<8xf32>
    %17 = vector.shape_cast %16 : vector<8xf32> to vector<8x1xf32>
    %cst_9 = arith.constant 1.000000e+00 : f32
    %18 = vector.broadcast %cst_9 : f32 to vector<8x1xf32>
    %19 = arith.mulf %18, %17 : vector<8x1xf32>
    %cst_10 = arith.constant 1.000000e+00 : f32
    %20 = vector.broadcast %cst_10 : f32 to vector<8x1xf32>
    %21 = arith.addf %20, %19 : vector<8x1xf32>
    %cst_11 = arith.constant 5.000000e-01 : f32
    %22 = vector.broadcast %cst_11 : f32 to vector<8x1xf32>
    %23 = arith.mulf %22, %14 : vector<8x1xf32>
    %24 = arith.addf %21, %23 : vector<8x1xf32>
    %25 = vector.broadcast %24 : vector<8x1xf32> to vector<8x32xf32>
    %26 = arith.mulf %25, %8 : vector<8x32xf32>
    %cst_12 = arith.constant 5.000000e-01 : f32
    %27 = vector.broadcast %cst_12 : f32 to vector<8x1xf32>
    %28 = arith.mulf %27, %11 : vector<8x1xf32>
    %cst_13 = arith.constant 1.000000e+00 : f32
    %29 = vector.broadcast %cst_13 : f32 to vector<8x1xf32>
    %30 = arith.subf %29, %28 : vector<8x1xf32>
    %31 = vector.broadcast %30 : vector<8x1xf32> to vector<8x32xf32>
    %32 = arith.mulf %31, %1 : vector<8x32xf32>
    %33 = arith.addf %26, %32 : vector<8x32xf32>
    %cst_14 = arith.constant 1.000000e+00 : f32
    %34 = vector.broadcast %cst_14 : f32 to vector<8x1xf32>
    %35 = arith.mulf %34, %17 : vector<8x1xf32>
    %cst_15 = arith.constant 1.000000e+00 : f32
    %36 = vector.broadcast %cst_15 : f32 to vector<8x1xf32>
    %37 = arith.addf %36, %35 : vector<8x1xf32>
    %cst_16 = arith.constant 2.500000e-01 : f32
    %38 = vector.broadcast %cst_16 : f32 to vector<8x1xf32>
    %39 = arith.mulf %38, %11 : vector<8x1xf32>
    %40 = arith.mulf %39, %14 : vector<8x1xf32>
    %41 = arith.addf %37, %40 : vector<8x1xf32>
    %cst_17 = arith.constant 1.000000e+00 : f32
    %42 = vector.broadcast %cst_17 : f32 to vector<8x1xf32>
    %43 = arith.divf %42, %41 : vector<8x1xf32>
    %44 = vector.broadcast %43 : vector<8x1xf32> to vector<8x32xf32>
    %45 = arith.mulf %33, %44 : vector<8x32xf32>
    %46 = arith.mulf %45, %45 : vector<8x32xf32>
    %cst_18 = arith.constant dense<0.000000e+00> : vector<8xf32>
    %47 = vector.multi_reduction <add>, %46, %cst_18 [1] : vector<8x32xf32> to vector<8xf32>
    %48 = vector.shape_cast %47 : vector<8xf32> to vector<8x1xf32>
    %cst_19 = arith.constant 1.000000e-24 : f32
    %49 = vector.broadcast %cst_19 : f32 to vector<8x1xf32>
    %50 = arith.addf %48, %49 : vector<8x1xf32>
    %51 = math.sqrt %50 : vector<8x1xf32>
    %52 = tpu.reciprocal %51 {approx = true} : vector<8x1xf32> -> vector<8x1xf32>
    %cst_20 = arith.constant 5.000000e-01 : f32
    %53 = vector.broadcast %cst_20 : f32 to vector<8x1xf32>
    %54 = arith.mulf %53, %6 : vector<8x1xf32>
    %cst_21 = arith.constant 1.000000e+00 : f32
    %55 = vector.broadcast %cst_21 : f32 to vector<8x1xf32>
    %56 = arith.addf %55, %54 : vector<8x1xf32>
    %cst_22 = arith.constant 1.41421354 : f32
    %57 = vector.broadcast %cst_22 : f32 to vector<8x1xf32>
    %58 = arith.mulf %56, %57 : vector<8x1xf32>
    %cst_23 = arith.constant 5.000000e-01 : f32
    %59 = vector.broadcast %cst_23 : f32 to vector<8x1xf32>
    %60 = arith.mulf %59, %51 : vector<8x1xf32>
    %61 = math.sqrt %60 : vector<8x1xf32>
    %cst_24 = arith.constant -9.990000e-01 : f32
    %cst_25 = arith.constant 9.990000e-01 : f32
    %62 = vector.broadcast %cst_24 : f32 to vector<8x1xf32>
    %63 = arith.maximumf %62, %61 : vector<8x1xf32>
    %64 = vector.broadcast %cst_25 : f32 to vector<8x1xf32>
    %65 = arith.minimumf %64, %63 : vector<8x1xf32>
    %cst_26 = arith.constant 1.000000e+00 : f32
    %66 = vector.broadcast %cst_26 : f32 to vector<8x1xf32>
    %67 = arith.addf %66, %65 : vector<8x1xf32>
    %cst_27 = arith.constant 1.000000e+00 : f32
    %68 = vector.broadcast %cst_27 : f32 to vector<8x1xf32>
    %69 = arith.subf %68, %65 : vector<8x1xf32>
    %70 = arith.divf %67, %69 : vector<8x1xf32>
    %71 = math.log %70 : vector<8x1xf32>
    %cst_28 = arith.constant 5.000000e-01 : f32
    %72 = vector.broadcast %cst_28 : f32 to vector<8x1xf32>
    %73 = arith.mulf %72, %71 : vector<8x1xf32>
    %74 = arith.mulf %58, %73 : vector<8x1xf32>
    %75 = arith.mulf %74, %52 : vector<8x1xf32>
    %76 = vector.broadcast %75 : vector<8x1xf32> to vector<8x32xf32>
    %77 = arith.mulf %76, %45 : vector<8x32xf32>
    %78 = arith.truncf %77 : vector<8x32xf32> to vector<8x32xbf16>
    %c0_29 = arith.constant 0 : index
    %c0_30 = arith.constant 0 : index
    %79 = vector.load %arg4[%c0_29, %c0_30] : memref<32x96xbf16, #tpu.memory_space<vmem>>, vector<32x96xbf16>
    %cst_31 = arith.constant dense<0.000000e+00> : vector<8x96xf32>
    %80 = tpu.matmul %78, %79, %cst_31 {dimension_numbers = #tpu.dot_dimension_numbers<[1], [0], [0], [1], [0, 0, 1, 1], [], []>} : vector<8x32xbf16>, vector<32x96xbf16>, vector<8x96xf32> -> vector<8x96xf32>
    %c0_32 = arith.constant 0 : index
    %c0_33 = arith.constant 0 : index
    %81 = vector.load %arg5[%c0_32, %c0_33] : memref<1x96xf32, #tpu.memory_space<vmem>>, vector<1x96xf32>
    %82 = vector.broadcast %81 : vector<1x96xf32> to vector<8x96xf32>
    %83 = arith.addf %80, %82 : vector<8x96xf32>
    %84 = arith.truncf %83 : vector<8x96xf32> to vector<8x96xbf16>
    %c0_34 = arith.constant 0 : index
    %c0_35 = arith.constant 0 : index
    %c0_36 = arith.constant 0 : index
    %85 = vector.load %arg6[%c0_34, %c0_35, %c0_36] : memref<1x8x96xbf16, #tpu.memory_space<vmem>>, vector<1x8x96xbf16>
    %86 = vector.shape_cast %85 : vector<1x8x96xbf16> to vector<8x96xbf16>
    %87 = vector.shape_cast %84 : vector<8x96xbf16> to vector<1x8x96xbf16>
    tpu.vector_store %arg6[%c0_34, %c0_35, %c0_36], %87 {strides = array<i32>} : memref<1x8x96xbf16, #tpu.memory_space<vmem>>, vector<1x8x96xbf16>,
    return
  }
  func.func @transform_0(%arg0: i32, %arg1: i32) -> (i32, i32, i32) {
    %c0_i32 = arith.constant 0 : i32
    %c0_i32_0 = arith.constant 0 : i32
    return %arg0, %arg1, %c0_i32 : i32, i32, i32
  }
  func.func @transform_1(%arg0: i32, %arg1: i32) -> (i32, i32, i32) {
    %c0_i32 = arith.constant 0 : i32
    %c0_i32_0 = arith.constant 0 : i32
    return %arg0, %arg1, %c0_i32 : i32, i32, i32
  }
  func.func @transform_2(%arg0: i32, %arg1: i32) -> (i32, i32) {
    %c0_i32 = arith.constant 0 : i32
    %c0_i32_0 = arith.constant 0 : i32
    %c0_i32_1 = arith.constant 0 : i32
    return %c0_i32, %c0_i32_0 : i32, i32
  }
  func.func @transform_3(%arg0: i32, %arg1: i32) -> (i32, i32) {
    %c0_i32 = arith.constant 0 : i32
    %c0_i32_0 = arith.constant 0 : i32
    %c0_i32_1 = arith.constant 0 : i32
    return %c0_i32, %c0_i32_0 : i32, i32
  }
  func.func @transform_4(%arg0: i32, %arg1: i32) -> (i32, i32, i32) {
    %c0_i32 = arith.constant 0 : i32
    %c0_i32_0 = arith.constant 0 : i32
    return %arg0, %arg1, %c0_i32 : i32, i32, i32
  }
}

</mosaic_0001>

<bundles_post_ra>
// kernel: tpu_custom_call.1
= control target key start
LH: loop header
LB: loop body
LE: loop exit
PB: predicated region body
PF: predicated region fallthrough
CT: control target
= control target key end

     0   :  { %s1152_s0 = inlined_call_operand.hbm [shape: f32[2,8,32], index: 0, kind: input, shape index: {}]   ;;  %s1153_s1 = inlined_call_operand.hbm [shape: f32[2,8,32], index: 1, kind: input, shape index: {}]   ;;  %s1154_s2 = inlined_call_operand.hbm [shape: bf16[32,96], index: 2, kind: input, shape index: {}]   ;;  %s1155_s3 = inlined_call_operand.vmem [shape: f32[1,96], index: 3, kind: input, shape index: {}]   ;;  %s1156_s4 = inlined_call_operand.hbm [shape: bf16[2,8,96], index: 4, kind: output, shape index: {}]  }
   0x1   :  { %1163 = sst [smem:[#allocation15_spill]] %s1154_s2 }
   0x2   :  { %9 = vsyncpa [#allocation3], 0 }
   0x3   :  { %11 = vsyncpa [#allocation3 + $0x1], 0 }
   0x4   :  { %12 = vsyncpa [#allocation6], 0 }
   0x5   :  { %14 = vsyncpa [#allocation6 + $0x1], 0 }
   0x6   :  { %15 = vsyncpa [#allocation4], 0 }
   0x7   :  { %17 = vsyncpa [#allocation4 + $0x1], 0  ;;  %s896_s15 = smov 0   ;;  %s898_s16 = smov 0  }
   0x8   :  { %s900_s17 = smov 0   ;;  %s902_s18 = smov 0  }
   0x9   :  { %s904_s19 = smov 0   ;;  %s906_s20 = smov 0  }
   0xa LB: > { %1164 = sst [smem:[#allocation13_spill]] %s857_s19  ;;  %s927_s21 = sadd.s32 4294967295, %s861_s20   ;;  %s861_s20 = sphi %s906_s20, %s23_s20   ;;  %s857_s19 = sphi %s904_s19, %s1183_s19   ;;  %s853_s18 = sphi %s902_s18, %s1182_s18   ;;  %s849_s17 = sphi %s900_s17, %s1186_s17   ;;  %s845_s16 = sphi %s898_s16, %s1185_s16   ;;  %s841_s15 = sphi %s896_s15, %s1184_s15  }
   0xb   : > { %s554_s22 = sadd.s32 4294967294, %s861_s20   ;;  %p57_p0 = scmp.ne.s32.totalorder %s845_s16, %s841_s15 }
   0xc   : > { %p1157_p1 = scmp.eq.s32.totalorder %s927_s21, 0  ;;  %p159_p3 = scmp.eq.s32.totalorder %s554_s22, 1 }
   0xd   : > { %p555_p5 = scmp.ge.s32.totalorder %s861_s20, 1  ;;  %p166_p7 = scmp.lt.s32.totalorder %s861_s20, 3 }
   0xe   : > { %p936_p4 = por %p1157_p1, %p57_p0  ;;  %p941_p6 = por %p159_p3, %p57_p0 }
   0xf   : > { %p946_p8 = pnand %p555_p5, %p166_p7  ;;  %s863_s26 = smov [#allocation7]  }
  0x10   : > { %s1165_s23 = scalar_select %p936_p4, 1, 0 }
  0x11   : > { %s1166_s24 = scalar_select %p941_p6, 1, 0 }
  0x12   : > { %s1167_s25 = scalar_select %p946_p8, 1, 0 }
  0x13   : > { %s178_s27 = sshll.u32 %s863_s26, 4  ;;  %p597_p9 = pneg %p946_p8  ;;  %s179_s27 = int_to_ptr.vmem [resolvable:$true] %s178_s27 }
  0x14   : > { %s35_s29 = sadd.s32 1, %s857_s19  ;;  %s1169_s2 = sld [smem:[#allocation15_spill]] }
  0x15   : > { %p955_p11 = pnand %p597_p9, %p1157_p1 }
  0x17   : > { %p685_p13 = pneg %p955_p11 }
  0x1a   : > { %s683_s6 = scalar_lea.hbm %s1169_s2, 256 }
  0x1b   : > { %p684_p12 = scmp.ne.s32.totalorder %s1169_s2, %s683_s6  ;;  %p690_p5 = scmp.lt.u32.totalorder %s683_s6, %s1169_s2 }
  0x1d   : > { %p686_p0 = pnand %p685_p13, %p684_p12 }
  0x1f   : > { %p687_p3 = pneg %p686_p0 }
  0x21   : > { %p692_p7 = pnand %p690_p5, %p687_p3 }
  0x23   : > { %695 = shalt.err (!%p692_p7)
}
  0x24   : > { %s696_s11 = scalar_lea.vmem %s179_s27, 256  ;;  %p704_p2 = scmp.lt.s32.totalorder %s179_s27, %s179_s27 }
  0x25   : > { %p697_p9 = scmp.ne.s32.totalorder %s179_s27, %s696_s11  ;;  %p705_p6 = scmp.lt.s32.totalorder %s696_s11, %s696_s11 }
  0x27   : > { %p699_p10 = pnand %p697_p9, %p685_p13  ;;  %p706_p4 = por %p705_p6, %p704_p2 }
  0x29   : > { %p700_p1 = pneg %p699_p10 }
  0x2b   : > { %p707_p8 = pnand %p706_p4, %p700_p1 }
  0x2d   : > { %710 = shalt.err (!%p707_p8)
}
  0x2e   : > { %s864_s12 = smov 64   ;;  %s865_s13 = smov 4  }
  0x2f   : > { %600 = dma.hbm_to_vmem [thread:$0]  (!%p955_p11), %s1169_s2, 256, %s179_s27, [#allocation6], %s864_s12, %s864_s12, %s865_s13  }
  0x30   : > { %p37_p1 = scmp.ge.s32.totalorder %s35_s29, 2  ;;  %s44_s26 = sadd.s32 1, %s849_s17 }
  0x31   : > { %p51_p2 = scmp.ne.s32.totalorder %s849_s17, %s845_s16  ;;  %p52_p4 = scmp.eq.s32.totalorder %s861_s20, 0 }
  0x32   : > { %s1188_s29 = smov (%p37_p1, %s35_s29), 0  ;;  %p1172_p8 = scmp.eq.s32.totalorder %s927_s21, 1 }
  0x33   : > { %1170 = sst [smem:[#allocation14_spill]] %s1188_s29  ;;  %p982_p6 = por %p52_p4, %p51_p2 }
  0x34   : > { %p988_p10 = por %p1172_p8, %p51_p2  ;;  %s39_s5 = ssub.s32 %s857_s19, %s1188_s29 }
  0x35   : > { %p613_p11 = scmp.lt.s32.totalorder %s861_s20, 2  ;;  %p42_p12 = scmp.eq.s32.totalorder %s39_s5, 0 }
  0x36   : > { %s1173_s28 = scalar_select %p988_p10, 1, 0 }
  0x37   : > { %s195_s27 = sand.u32 1, %s849_s17   ;;  %s559_s8 = sshll.u32 %s857_s19, 7 }
  0x38   : > { %s996_s6 = sshll.u32 %s195_s27, 3  ;;  %s1005_s11 = scalar_lea.hbm %s1152_s0, %s559_s8 }
  0x39   : > { %s999_s7 = scalar_select %p42_p12, %s849_s17, %s44_s26  }
  0x3a   : > { %s199_s12 = scalar_lea.vmem [#allocation2], %s996_s6  ;;  %p1012_p13 = pnand %p613_p11, %p982_p6 }
  0x3b   : > { %s207_s13 = sshll.u32 %s199_s12, 4  ;;  %s1019_s5 = scalar_lea.hbm %s1153_s1, %s559_s8  ;;  %s1008_s13 = int_to_ptr.vmem [resolvable:$true] %s207_s13 }
  0x3c   : > { %s214_s9 = sand.u32 1, %s861_s20   ;;  %s196_s10 = scalar_lea.sflag [#allocation3], %s195_s27 }
  0x3d   : > { %s711_s2 = scalar_lea.hbm %s1005_s11, 128  ;;  %p713_p3 = pneg %p1012_p13 }
  0x3e   : > { %p712_p0 = scmp.ne.s32.totalorder %s1005_s11, %s711_s2  ;;  %s716_s29 = scalar_lea.hbm %s1152_s0, 256 }
  0x3f   : > { %p717_p9 = scmp.lt.u32.totalorder %s1005_s11, %s1152_s0  ;;  %p718_p1 = scmp.lt.u32.totalorder %s716_s29, %s711_s2 }
  0x40   : > { %p714_p5 = pnand %p713_p3, %p712_p0  ;;  %p720_p4 = scmp.lt.u32.totalorder %s711_s2, %s1005_s11 }
  0x41   : > { %p719_p2 = por %p718_p1, %p717_p9 }
  0x42   : > { %p715_p7 = pneg %p714_p5 }
  0x43   : > { %p721_p6 = por %p720_p4, %p719_p2 }
  0x45   : > { %p722_p8 = pnand %p721_p6, %p715_p7 }
  0x47   : > { %725 = shalt.err (!%p722_p8)
}
  0x48   : > { %s726_s27 = scalar_lea.vmem %s1008_s13, 128  ;;  %s866_s8 = smov [#allocation2]  }
  0x49   : > { %p727_p11 = scmp.ne.s32.totalorder %s1008_s13, %s726_s27  ;;  %s731_s26 = sshll.u32 %s866_s8, 4  ;;  %s732_s26 = int_to_ptr.vmem [resolvable:$false] %s731_s26 }
  0x4a   : > { %s733_s19 = scalar_lea.vmem %s732_s26, 256  ;;  %p734_p5 = scmp.lt.s32.totalorder %s1008_s13, %s732_s26 }
  0x4b   : > { %p729_p12 = pnand %p727_p11, %p713_p3  ;;  %p735_p9 = scmp.lt.s32.totalorder %s733_s19, %s726_s27 }
  0x4d   : > { %p730_p0 = pneg %p729_p12  ;;  %p736_p1 = por %p735_p9, %p734_p5 }
  0x4f   : > { %p737_p2 = pnand %p736_p1, %p730_p0 }
  0x51   : > { %740 = shalt.err (!%p737_p2)
}
  0x52   : > { %604 = dma.hbm_to_vmem [thread:$0]  (!%p1012_p13), %s1005_s11, 128, %s1008_s13, %s196_s10  }
  0x53   : > { %s218_s2 = scalar_lea.vmem [#allocation5], %s996_s6  ;;  %s215_s30 = scalar_lea.sflag [#allocation6], %s214_s9 }
  0x54   : > { %s226_s29 = sshll.u32 %s218_s2, 4  ;;  %s741_s12 = scalar_lea.hbm %s1019_s5, 128  ;;  %s227_s29 = int_to_ptr.vmem [resolvable:$true] %s226_s29 }
  0x55   : > { %p742_p7 = scmp.ne.s32.totalorder %s1019_s5, %s741_s12  ;;  %s746_s8 = scalar_lea.hbm %s1153_s1, 256 }
  0x56   : > { %p747_p8 = scmp.lt.u32.totalorder %s1019_s5, %s1153_s1  ;;  %p748_p11 = scmp.lt.u32.totalorder %s746_s8, %s741_s12 }
  0x57   : > { %p744_p4 = pnand %p742_p7, %p713_p3  ;;  %p750_p0 = scmp.lt.u32.totalorder %s741_s12, %s1019_s5 }
  0x58   : > { %p749_p12 = por %p748_p11, %p747_p8 }
  0x59   : > { %p745_p6 = pneg %p744_p4 }
  0x5a   : > { %p751_p5 = por %p750_p0, %p749_p12 }
  0x5c   : > { %p752_p9 = pnand %p751_p5, %p745_p6 }
  0x5e   : > { %755 = shalt.err (!%p752_p9)
}
  0x5f   : > { %s756_s6 = scalar_lea.vmem %s227_s29, 128  ;;  %s867_s11 = smov [#allocation5]  }
  0x60   : > { %p757_p1 = scmp.ne.s32.totalorder %s227_s29, %s756_s6  ;;  %s761_s13 = sshll.u32 %s867_s11, 4  ;;  %s762_s13 = int_to_ptr.vmem [resolvable:$false] %s761_s13 }
  0x61   : > { %s763_s9 = scalar_lea.vmem %s762_s13, 256  ;;  %p764_p4 = scmp.lt.s32.totalorder %s227_s29, %s762_s13 }
  0x62   : > { %p759_p2 = pnand %p757_p1, %p713_p3  ;;  %p765_p10 = scmp.lt.s32.totalorder %s763_s9, %s756_s6 }
  0x64   : > { %p760_p7 = pneg %p759_p2  ;;  %p766_p8 = por %p765_p10, %p764_p4 }
  0x66   : > { %p767_p11 = pnand %p766_p8, %p760_p7 }
  0x68   : > { %770 = shalt.err (!%p767_p11)
}
  0x69   : > { %607 = dma.hbm_to_vmem [thread:$0]  (!%p1012_p13), %s1019_s5, 128, %s227_s29, %s215_s30  }
  0x6a   : > { %p1175_p6 = scmp.ne.s32.totalorder %s1167_s25, 0 }
  0x6b   : > { %s1072_s10 = sand.u32 (!%p1175_p6), 1, %s845_s16   ;;  %p1176_p3 = scmp.ne.s32.totalorder (!%p1175_p6), %s1165_s23, 0 }
  0x6c   : > { %235 = sbr.rel (%p1175_p6) target bundleno = 740 (0x2e4), region = 36  ;;  %s563_s2 = sshll.u32 (!%p1175_p6), %s1072_s10, 3 }
  0x6d   : > { %s238_s12 = scalar_lea.sflag (!%p1175_p6), [#allocation3], %s1072_s10  ;;  %s241_s22 = scalar_lea.vmem (!%p1175_p6), [#allocation2], %s563_s2 }
  0x73   : > { %824 = dma.done.wait (%p1176_p3), %s238_s12, 128  }
  0x74   : > { %826 = vsyncadd (%p1176_p3), %s238_s12, 4294967168  ;;  %s246_s14 = sand.u32 1, %s927_s21   ;;  %s250_s25 = scalar_lea.vmem [#allocation5], %s563_s2 }
  0x75   : > { %s247_s5 = scalar_lea.sflag [#allocation6], %s246_s14 }
  0x76   : > { %828 = dma.done.wait (%p1176_p3), %s247_s5, 128  }
  0x77   : > { %830 = vsyncadd (%p1176_p3), %s247_s5, 4294967168  ;;  %p1177_p10 = scmp.eq.s32.totalorder %s927_s21, 0 }
  0x79   : > { %832 = dma.done.wait (%p1177_p10), [#allocation6], 256   ;;  %p1178_p13 = pmov %p1177_p10 }
  0x7a   : > { %v286_v0 = vld [vmem:[%s250_s25] sm:$0xff]  ;;  %v285_v1 = vld [vmem:[%s241_s22] sm:$0xff]  ;;  %vm288_vm0 = vcmask 261120   ;;  %v868_v30 = vmov 0.0   ;;  %vm869_vm1 = vmmov 0   ;;  %s566_s21 = sshll.u32 %s1072_s10, 2 }
  0x7b   : > { %834 = vsyncadd (%p1178_p13), [#allocation6], 4294967040  ;;  %v292_v2 = vsub.f32 0.0, %v286_v0  ;;  %v297_v5 = vmul.f32 %v285_v1, %v285_v1  ;;  %v287_v9 = vmul.f32 %v286_v0, %v286_v0  ;;  %v669_v29 = vld [vmem:[#allocation7] sm:$0xff]   ;;  %579 = vmatprep.subr.bf16.mxu0 %v868_v30  ;;  %v670_v31 = vld [vmem:[#allocation7 + $0x8] sm:$0xff]   ;;  %583 = vmatprep.mubr.msk.bf16.mxu0 %vm869_vm1, %v868_v30  ;;  %s573_s30 = sshll.u32 %s853_s18, 6 }
  0x7c   : > { %580 = vmatpush3.bf16.msra.mxu0 %v669_v29  ;;  %v568_v62 = vld [vmem:[%s1155_s3] ss:$0 sm:$0xff]  ;;  %s283_s27 = scalar_lea.vmem [#allocation8], %s566_s21  ;;  %vm423_vm6 = vcmask 781312   ;;  %s1103_s6 = scalar_lea.hbm %s1156_s4, %s573_s30 }
  0x7d   : > { %v293_v3 = vmul.f32 %v292_v2, %v292_v2  ;;  %v301_v4 = vmul.f32 %v292_v2, %v285_v1  ;;  %v298_v8 = vsel %vm288_vm0, %v297_v5, 0.0  ;;  %v289_v10 = vsel %vm288_vm0, %v287_v9, 0.0  ;;  %581 = vmatprep.subr.bf16.mxu0 %v868_v30  ;;  %s440_s8 = sshll.u32 %s283_s27, 4  ;;  %s426_s18 = scalar_lea.sflag [#allocation4], %s1072_s10  ;;  %s1105_s8 = int_to_ptr.vmem [resolvable:$true] %s440_s8 }
  0x7e   : > { %s771_s11 = scalar_lea.vmem %s1105_s8, 64  ;;  %p1179_p0 = scmp.ne.s32.totalorder %s1173_s28, 0 }
  0x7f   : > { %v294_v6 = vsel %vm288_vm0, %v293_v3, 0.0  ;;  %v302_v7 = vsel %vm288_vm0, %v301_v4, 0.0  ;;  %p772_p12 = scmp.ne.s32.totalorder %s1105_s8, %s771_s11  ;;  %s870_s13 = smov [#allocation8]  }
  0x80   : > { %295 = vadd.xlane.f32.xlu0 %v294_v6  ;;  %303 = vadd.xlane.f32.xlu1 %v302_v7  ;;  %s775_s9 = sshll.u32 %s870_s13, 4  ;;  %s776_s9 = int_to_ptr.vmem [resolvable:$false] %s775_s9 }
  0x81   : > { %582 = vmatpush3.bf16.msra.mxu0 %v670_v31  ;;  %p773_p5 = pnand %p772_p12, %p1179_p0  ;;  %s777_s2 = scalar_lea.vmem %s776_s9, 128 }
  0x82   : > { %p778_p1 = scmp.lt.s32.totalorder %s1105_s8, %s776_s9  ;;  %p779_p2 = scmp.lt.s32.totalorder %s777_s2, %s771_s11 }
  0x83   : > { %p774_p9 = pneg %p773_p5 }
  0x84   : > { %299 = vadd.xlane.f32.xlu0 %v298_v8  ;;  %p780_p7 = por %p779_p2, %p778_p1 }
  0x86   : > { %p781_p4 = pnand %p780_p7, %p774_p9 }
  0x88   : > { %290 = vadd.xlane.f32.xlu0 %v289_v10 }
 0x10d   : > { %v296_v11 = vpop.xlane.xlu0 %295  ;;  %v304_v12 = vpop.xlane.xlu1 %303 }
 0x10e   : > { %v313_v13 = vmul.f32 0.25, %v296_v11  ;;  %v305_v14 = vadd.f32 1.0, %v304_v12  ;;  %v309_v19 = vmul.f32 0.5, %v296_v11 }
 0x110   : > { %v310_v21 = vsub.f32 1.0, %v309_v19 }
 0x111   : > { %v300_v15 = vpop.xlane.xlu0 %299 }
 0x112   : > { %v314_v16 = vmul.f32 %v313_v13, %v300_v15  ;;  %v306_v17 = vmul.f32 0.5, %v300_v15  ;;  %v311_v23 = vmul.f32 %v310_v21, %v285_v1 }
 0x114   : > { %v315_v18 = vadd.f32 %v314_v16, %v305_v14  ;;  %v307_v20 = vadd.f32 %v306_v17, %v305_v14 }
 0x115   : > { %v291_v50 = vpop.xlane.xlu0 %290 }
 0x116   : > { %671 = vrcp.f32 %v315_v18  ;;  %v308_v22 = vmul.f32 %v307_v20, %v292_v2  ;;  %v332_v51 = vmul.f32 0.5, %v291_v50 }
 0x118   : > { %v312_v24 = vadd.f32 %v311_v23, %v308_v22  ;;  %v333_v52 = vadd.f32 1.0, %v332_v51 }
 0x11a   : > { %v334_v55 = vmul.f32 1.4142135, %v333_v52 }
 0x120   : > { %v672_v25 = vpop.eup %671 }
 0x121   : > { %v318_v26 = vmul.f32 %v672_v25, %v312_v24 }
 0x123   : > { %v319_v27 = vmul.f32 %v318_v26, %v318_v26 }
 0x125   : > { %v320_v28 = vsel %vm288_vm0, %v319_v27, 0.0 }
 0x126   : > { %321 = vadd.xlane.f32.xlu1 %v320_v28 }
 0x1b3   : > { %v322_v32 = vpop.xlane.xlu1 %321 }
 0x1b4   : > { %v323_v33 = vadd.f32 1e-24, %v322_v32 }
 0x1b6   : > { %673 = vrsqrt.f32 %v323_v33  ;;  %vm326_vm2 = vcmp.eq.f32.partialorder %v323_v33, inf  ;;  %v329_v36 = vand.u32 2147483648, %v323_v33  ;;  %vm328_vm3 = vcmp.eq.f32.partialorder %v323_v33, 0.0 }
 0x1c0   : > { %v674_v34 = vpop.eup %673 }
 0x1c1   : > { %v325_v35 = vmul.f32 %v674_v34, %v323_v33 }
 0x1c3   : > { %v327_v37 = vsel %vm326_vm2, %v323_v33, %v325_v35 }
 0x1c4   : > { %v330_v38 = vsel %vm328_vm3, %v329_v36, %v327_v37 }
 0x1c5   : > { %v335_v39 = vmul.f32 0.5, %v330_v38 }
 0x1c7   : > { %675 = vrsqrt.f32 %v335_v39  ;;  %vm338_vm4 = vcmp.eq.f32.partialorder %v335_v39, inf  ;;  %v341_v42 = vand.u32 2147483648, %v335_v39  ;;  %vm340_vm5 = vcmp.eq.f32.partialorder %v335_v39, 0.0 }
 0x1d1   : > { %v676_v40 = vpop.eup %675 }
 0x1d2   : > { %v337_v41 = vmul.f32 %v676_v40, %v335_v39 }
 0x1d4   : > { %v339_v43 = vsel %vm338_vm4, %v335_v39, %v337_v41 }
 0x1d5   : > { %v342_v44 = vsel %vm340_vm5, %v341_v42, %v339_v43 }
 0x1d6   : > { %v567_v45 = vclamps-f32 %v342_v44, 0.999 }
 0x1d8   : > { %v346_v46 = vsub.f32 1.0, %v567_v45  ;;  %v345_v47 = vadd.f32 1.0, %v567_v45 }
 0x1da   : > { %677 = vrcp.f32 %v346_v46 }
 0x1e4   : > { %v678_v48 = vpop.eup %677 }
 0x1e5   : > { %v348_v49 = vmul.f32 %v678_v48, %v345_v47 }
 0x1e7   : > { %679 = vlog2.f32 %v348_v49 }
 0x1e8   : > { %681 = vrcp.f32 %v330_v38 }
 0x1f1   : > { %v680_v53 = vpop.eup %679 }
 0x1f2   : > { %v350_v54 = vmul.f32 0.6931472, %v680_v53  ;;  %v682_v58 = vpop.eup %681 }
 0x1f4   : > { %v351_v56 = vmul.f32 0.5, %v350_v54 }
 0x1f6   : > { %v352_v57 = vmul.f32 %v351_v56, %v334_v55 }
 0x1f8   : > { %v353_v59 = vmul.f32 %v682_v58, %v352_v57 }
 0x1fa   : > { %v354_v60 = vmul.f32 %v353_v59, %v318_v26 }
 0x1fc   : > { %v355_v61 = vpack.c.bf16 %v354_v60, %v354_v60 }
 0x1fe   : > { %584 = vmatmul.mubr.msk.bf16.vlgmr.msra.gmra.mrb[0].mxu0 %vm288_vm0, %v355_v61 }
 0x2d1   : > { %v416_v63 = vpop.f32.mrb[0].mxu0 }
 0x2d2   : > { %v417_v0 = vadd.f32 %v568_v62, %v416_v63  ;;  %v585_v1 = vpop.f32.mrb[1].mxu0 }
 0x2d3   : > { %v419_v2 = vpop.f32.mrb[2].mxu0 }
 0x2d4   : > { %v422_v3 = vpack.c.bf16 %v417_v0, %v417_v0  ;;  %v586_v4 = vpop.f32.mrb[3].mxu0 }
 0x2d6   : > { %424 = vst.msk [vmem:[%s283_s27] sm:$0xf] %vm423_vm6, %v422_v3 }
 0x2d7   : > { %784 = shalt.err (!%p781_p4)
}
 0x2d8   : > { %s785_s10 = scalar_lea.hbm %s1103_s6, 64  ;;  %s789_s14 = scalar_lea.hbm %s1156_s4, 128 }
 0x2d9   : > { %p786_p8 = scmp.ne.s32.totalorder %s1103_s6, %s785_s10  ;;  %p790_p3 = scmp.lt.u32.totalorder %s1103_s6, %s1156_s4 }
 0x2da   : > { %p791_p10 = scmp.lt.u32.totalorder %s789_s14, %s785_s10  ;;  %p793_p12 = scmp.lt.u32.totalorder %s785_s10, %s1103_s6 }
 0x2db   : > { %p787_p11 = pnand %p786_p8, %p1179_p0 }
 0x2dc   : > { %p792_p13 = por %p791_p10, %p790_p3 }
 0x2dd   : > { %p788_p6 = pneg %p787_p11 }
 0x2de   : > { %p794_p5 = por %p793_p12, %p792_p13 }
 0x2e0   : > { %p795_p9 = pnand %p794_p5, %p788_p6 }
 0x2e2   : > { %798 = shalt.err (!%p795_p9)
}
 0x2e3   : > { %595 = dma.vmem_to_hbm [thread:$0]  (%p1179_p0), %s1105_s8, 64, %s1103_s6, %s426_s18  }
 0x2e4 PF: > { %s452_s21 = sand.u32 1, %s841_s15   ;;  %p1180_p1 = scmp.ne.s32.totalorder %s1166_s24, 0 }
 0x2e5   : > { %p1181_p2 = scmp.ge.s32.totalorder %s861_s20, 2  ;;  %s453_s23 = scalar_lea.sflag [#allocation4], %s452_s21 }
 0x2e7   : > { %p609_p7 = pnand %p1181_p2, %p1180_p1 }
 0x2e9   : > { %836 = dma.done.wait (!%p609_p7), %s453_s23, 64  }
 0x2ea   : > { %838 = vsyncadd (!%p609_p7), %s453_s23, 4294967232  ;;  %s23_s20 = sadd.s32 1, %s861_s20   ;;  %s1182_s18 = sld [smem:[#allocation13_spill]] }
 0x2eb   : > { %p20_p4 = scmp.ge.s32.totalorder %s23_s20, 4   ;;  %s1183_s19 = sld [smem:[#allocation14_spill]] }
 0x2ec   : > { %s1184_s15 = smov %s845_s16  ;;  %s1185_s16 = smov %s849_s17 }
 0x2ed   : > { %s1186_s17 = smov %s999_s7  ;;  %22 = sbr.rel (!%p20_p4) target bundleno = 10 (0xa), region = 98 }
 0x2f4   :  { %458 = vsyncpa [#allocation3], 1 }
 0x2f5   :  { %460 = vsyncpa [#allocation3 + $0x1], 1 }
 0x2f6   :  { %461 = vsyncpa [#allocation6], 1 }
 0x2f7   :  { %463 = vsyncpa [#allocation6 + $0x1], 1 }
 0x2f8   :  { %464 = vsyncpa [#allocation4], 1 }
 0x2f9   :  { %466 = vsyncpa [#allocation4 + $0x1], 1 }

</bundles_post_ra>
